<compile_context>
chip_gen: v7x
topology: tpu7x:2x2x1
jax: 0.10.0
libtpu: 0.0.40
codegen_flags: <defaults>
</compile_context>

<pallas_src>
import functools
import math

import jax
import jax.numpy as jnp
from jax.experimental import pallas as pl
from jax.experimental.pallas import tpu as pltpu


# ---------------------------------------------------------------------------
# Generation-aware VMEM sizing
# ---------------------------------------------------------------------------
def _vmem_budget_and_limit():
    """Returns (tile_budget_bytes, scoped_vmem_limit_bytes) for this chip."""
    try:
        cap = pltpu.get_tpu_info().vmem_capacity_bytes
    except Exception:                       # conservative fallback
        cap = 64 * 1024 * 1024              # assume the smallest (v7x per-TC) VMEM
    # Scoped limit: 3/4 of physical, capped -> v7x ~48 MiB, v5e/v6e ~96 MiB.
    limit = min(cap * 3 // 4, 96 * 1024 * 1024)
    # Tile budget: ~half the limit; the rest is pipeline depth / internal scratch.
    budget = limit // 2
    return budget, limit


# ---------------------------------------------------------------------------
# Kernels
# ---------------------------------------------------------------------------
def _pe_add_kernel(x_ref, pe_ref, o_ref):
    # x_ref: (Bblk, TS, D)   pe_ref: (1, TS, D) -- broadcasts over batch block
    o_ref[...] = x_ref[...] + pe_ref[...]


def _pe_concat_kernel(x_ref, pe_ref, o_ref):
    # x_ref: (Bblk, TS, D)   pe_ref: (1, TS, D)   o_ref: (Bblk, TS, 2*D)
    # When D is a multiple of 128 (production shapes) both stores are
    # lane-aligned, full-width, unmasked.  For D < 128 (toy demo) they lower to
    # masked stores; pad D to 128 upstream if that path ever becomes hot.
    d = x_ref.shape[-1]
    o_ref[:, :, :d] = x_ref[...]
    o_ref[:, :, d:] = jnp.broadcast_to(pe_ref[...], x_ref.shape)


# ---------------------------------------------------------------------------
# Parameter setup (matches torch __init__ exactly)
# ---------------------------------------------------------------------------
def make_positional_encoding(d_model: int, max_len: int = 5000,
                             dtype=jnp.float32) -> jnp.ndarray:
    """Build the (1, max_len, d_model) sinusoidal table.

    Built in f32 for accuracy, cast ONCE here to the model dtype (e.g. bf16).
    The forward wrapper requires pe_table.dtype == x.dtype so no per-call cast
    of the full table ever happens inside the jitted hot path.
    """
    position = jnp.arange(0, max_len, dtype=jnp.float32)[:, None]       # (max_len, 1)
    div_term = jnp.exp(
        jnp.arange(0, d_model, 2, dtype=jnp.float32)
        * -(math.log(10000.0) / d_model)
    )                                                                    # (d_model/2,)
    pe = jnp.zeros((max_len, d_model), dtype=jnp.float32)
    pe = pe.at[:, 0::2].set(jnp.sin(position * div_term))
    pe = pe.at[:, 1::2].set(jnp.cos(position * div_term))
    return pe[None, :, :].astype(dtype)                                  # (1, max_len, d_model)


# ---------------------------------------------------------------------------
# Tiling helpers
# ---------------------------------------------------------------------------
def _sublane_multiple(dtype) -> int:
    # 8 for 32-bit, 16 for 16-bit, 32 for 8-bit (second-to-last dim packing).
    return 32 // jnp.dtype(dtype).itemsize


def _choose_tiles(b: int, s: int, d: int, out_d: int, dtype, budget: int):
    """Pick (batch_block, seq_tile) so the pipelined footprint fits `budget`."""
    itemsize = jnp.dtype(dtype).itemsize
    sub = _sublane_multiple(dtype)
    # Fold up to 8 batch rows into one block (fewer grid steps, bigger DMAs);
    # pick a divisor of b so blocks are never ragged along the leading dim.
    if b <= 8:
        bblk = b
    else:
        bblk = max(c for c in range(1, 9) if b % c == 0)
    # Conservative per-row footprint: x triple-buffered (pl.Buffered(3)),
    # pe / out double-buffered.
    bytes_per_row = (3 * bblk * d + 2 * d + 2 * bblk * out_d) * itemsize
    max_rows = max(sub, budget // bytes_per_row)
    # >= ~512 rows already reaches ~85% of the HBM roofline; cap at 1024 and
    # spend spare VMEM on pipeline depth instead of ever-bigger tiles.
    max_rows = min(max_rows, 1024)
    ts = s if s <= max_rows else max(sub, (max_rows // sub) * sub)
    return bblk, ts


def _x_spec(block_shape, index_map, n_steps):
    """BlockSpec for the streaming x input; deepen its pipeline when the grid
    is long enough for the extra buffer to matter (perf-review suggestion)."""
    if n_steps > 2:
        try:
            return pl.BlockSpec(block_shape, index_map,
                                pipeline_mode=pl.Buffered(3))
        except (TypeError, AttributeError):
            pass
    return pl.BlockSpec(block_shape, index_map)


# ---------------------------------------------------------------------------
# Wrapper
# ---------------------------------------------------------------------------
@functools.partial(jax.jit, static_argnames=("method", "alias_input"))
def positional_encoding_forward(x: jnp.ndarray,
                                pe_table: jnp.ndarray,
                                method: str = "concat",
                                alias_input: bool = False) -> jnp.ndarray:
    """x: (B, S, D);  pe_table: (1, max_len, D) in the SAME dtype as x."""
    if method not in ("add", "concat"):
        raise ValueError(f"{method} should be one of ('add', 'concat')")

    b, s, d = x.shape
    max_len = pe_table.shape[1]
    assert s <= max_len, f"seq_len={s} exceeds max_len={max_len}"
    assert pe_table.shape[-1] == d, "pe_table feature dim must match x"
    if pe_table.dtype != x.dtype:
        # Casting here would re-stream the full (1, max_len, D) table through
        # HBM on every call -- build the table in x's dtype once instead.
        raise ValueError(
            f"pe_table dtype {pe_table.dtype} != x dtype {x.dtype}; build it "
            "with make_positional_encoding(..., dtype=x.dtype).")

    if method == "add":
        kernel, out_d = _pe_add_kernel, d
    else:
        kernel, out_d = _pe_concat_kernel, 2 * d

    budget, vmem_limit = _vmem_budget_and_limit()
    bblk, ts = _choose_tiles(b, s, d, out_d, x.dtype, budget)

    pe = pe_table
    sub = _sublane_multiple(x.dtype)
    if ts % sub != 0 and s != max_len:
        # (8,128)-divisibility: a (1, ts, d) window on the full (1, max_len, d)
        # table needs ts % sublane == 0 (x/out are fine because ts == s == full
        # dim there).  Fall back to a pre-sliced table (one extra HBM copy) for
        # awkward sequence lengths only.
        pe = jax.lax.dynamic_slice(pe, (0, 0, 0), (1, s, d))

    n_seq_tiles = pl.cdiv(s, ts)
    n_batch_tiles = b // bblk
    n_steps = n_seq_tiles * n_batch_tiles

    extra_kwargs = {}
    if method == "add" and alias_input:
        # In-place update of x; only a win if the caller donates x.  Note: the
        # real ceiling for the add path is fusing the PE add into the
        # producer/consumer kernel -- aliasing saves an allocation, not bytes.
        extra_kwargs["input_output_aliases"] = {0: 0}

    # Grid: (seq_tiles, batch_tiles) with batch INNERMOST.  The PE index_map is
    # constant across the inner (batch) axis, so Pallas skips the PE copy-in on
    # consecutive steps: the table is fetched once per seq tile, not B times.
    out = pl.pallas_call(
        kernel,
        out_shape=jax.ShapeDtypeStruct((b, s, out_d), x.dtype),
        grid_spec=pltpu.PrefetchScalarGridSpec(
            num_scalar_prefetch=0,
            grid=(n_seq_tiles, n_batch_tiles),
            in_specs=[
                _x_spec((bblk, ts, d), lambda j, i: (i, j, 0), n_steps),  # x tile
                pl.BlockSpec((1, ts, d), lambda j, i: (0, j, 0)),         # PE (batch-invariant)
            ],
            out_specs=pl.BlockSpec((bblk, ts, out_d), lambda j, i: (i, j, 0)),
        ),
        compiler_params=pltpu.CompilerParams(
            # Seq tiles shard across TensorCores (v7x megacore); the batch axis
            # stays "arbitrary" so each core keeps the PE revisit/skip benefit.
            dimension_semantics=("parallel", "arbitrary"),
            vmem_limit_bytes=vmem_limit,
        ),
        **extra_kwargs,
    )(x, pe)
    return out


# ---------------------------------------------------------------------------
# Main
# ---------------------------------------------------------------------------
if __name__ == "__main__":
    key = jax.random.PRNGKey(0)

    batch, seq_len, d_model, max_len = 2, 8, 32, 64
    x = jax.random.normal(key, (batch, seq_len, d_model), dtype=jnp.float32)

    pe_table = make_positional_encoding(d_model, max_len, dtype=jnp.float32)

    # concat mode (default in the module)
    out_concat = jax.block_until_ready(
        positional_encoding_forward(x, pe_table, method="concat"))
    # add mode
    out_add = jax.block_until_ready(
        positional_encoding_forward(x, pe_table, method="add"))

    # Reference check in plain JAX (dropout in eval mode == identity)
    pe_slice = pe_table[:, :seq_len, :]
    ref_concat = jnp.concatenate(
        [x, jnp.broadcast_to(pe_slice, (batch, seq_len, d_model))], axis=-1)
    ref_add = x + pe_slice

    assert out_concat.shape == (batch, seq_len, 2 * d_model)
    assert out_add.shape == (batch, seq_len, d_model)
    assert jnp.allclose(out_concat, ref_concat, atol=1e-6)
    assert jnp.allclose(out_add, ref_add, atol=1e-6)

    # bf16 hot path (halves HBM traffic of this bandwidth-bound op): the table
    # is built in f32 and cast ONCE at construction, never inside the wrapper.
    xb = x.astype(jnp.bfloat16)
    pe_b = make_positional_encoding(d_model, max_len, dtype=jnp.bfloat16)
    out_add_b = jax.block_until_ready(
        positional_encoding_forward(xb, pe_b, method="add"))
    ref_add_b = (xb + pe_b[:, :seq_len, :]).astype(jnp.float32)
    assert out_add_b.dtype == jnp.bfloat16
    assert jnp.allclose(out_add_b.astype(jnp.float32), ref_add_b, atol=5e-2)

    print("KERNEL_OK")
</pallas_src>

<mosaic_0001>
module attributes {stable_mosaic.version = 11 : i64} {
  func.func @_pe_concat_kernel(%arg0: i32, %arg1: i32, %arg2: memref<2x8x32xf32, #tpu.memory_space<vmem>>, %arg3: memref<1x8x32xf32, #tpu.memory_space<vmem>>, %arg4: memref<2x8x64xf32, #tpu.memory_space<vmem>>) attributes {dimension_semantics = [#tpu.dimension_semantics<parallel>, #tpu.dimension_semantics<arbitrary>], iteration_bounds = array<i64: 1, 1>, scalar_prefetch = 0 : i64, scratch_operands = 0 : i64, tpu.core_type = #tpu.core_type<tc>, window_params = [{transform_indices = @transform_0, window_bounds = array<i64: 2, 8, 32>}, {transform_indices = @transform_1, window_bounds = array<i64: 1, 8, 32>}, {transform_indices = @transform_2, window_bounds = array<i64: 2, 8, 64>}]} {
    %c0 = arith.constant 0 : index
    %c0_0 = arith.constant 0 : index
    %c0_1 = arith.constant 0 : index
    %0 = vector.load %arg2[%c0, %c0_0, %c0_1] : memref<2x8x32xf32, #tpu.memory_space<vmem>>, vector<2x8x32xf32>
    %c0_2 = arith.constant 0 : index
    %c0_3 = arith.constant 0 : index
    %c0_4 = arith.constant 0 : index
    %1 = vector.load %arg4[%c0_2, %c0_3, %c0_4] : memref<2x8x64xf32, #tpu.memory_space<vmem>>, vector<2x8x32xf32>
    tpu.vector_store %arg4[%c0_2, %c0_3, %c0_4], %0 {strides = array<i32>} : memref<2x8x64xf32, #tpu.memory_space<vmem>>, vector<2x8x32xf32>,
    %c0_5 = arith.constant 0 : index
    %c0_6 = arith.constant 0 : index
    %c0_7 = arith.constant 0 : index
    %2 = vector.load %arg3[%c0_5, %c0_6, %c0_7] : memref<1x8x32xf32, #tpu.memory_space<vmem>>, vector<1x8x32xf32>
    %3 = vector.shape_cast %2 : vector<1x8x32xf32> to vector<1x8x32xf32>
    %4 = vector.broadcast %3 : vector<1x8x32xf32> to vector<2x8x32xf32>
    %c0_8 = arith.constant 0 : index
    %c0_9 = arith.constant 0 : index
    %c32 = arith.constant 32 : index
    %5 = vector.load %arg4[%c0_8, %c0_9, %c32] : memref<2x8x64xf32, #tpu.memory_space<vmem>>, vector<2x8x32xf32>
    tpu.vector_store %arg4[%c0_8, %c0_9, %c32], %4 {strides = array<i32>} : memref<2x8x64xf32, #tpu.memory_space<vmem>>, vector<2x8x32xf32>,
    return
  }
  func.func @transform_0(%arg0: i32, %arg1: i32) -> (i32, i32, i32) {
    %c0_i32 = arith.constant 0 : i32
    %c0_i32_0 = arith.constant 0 : i32
    return %arg1, %arg0, %c0_i32 : i32, i32, i32
  }
  func.func @transform_1(%arg0: i32, %arg1: i32) -> (i32, i32, i32) {
    %c0_i32 = arith.constant 0 : i32
    %c0_i32_0 = arith.constant 0 : i32
    %c0_i32_1 = arith.constant 0 : i32
    return %c0_i32, %arg0, %c0_i32_0 : i32, i32, i32
  }
  func.func @transform_2(%arg0: i32, %arg1: i32) -> (i32, i32, i32) {
    %c0_i32 = arith.constant 0 : i32
    %c0_i32_0 = arith.constant 0 : i32
    return %arg1, %arg0, %c0_i32 : i32, i32, i32
  }
}

</mosaic_0001>

<bundles_post_ra>
// kernel: positional_encoding_forward.1
= control target key start
LH: loop header
LB: loop body
LE: loop exit
PB: predicated region body
PF: predicated region fallthrough
CT: control target
= control target key end

     0   :  { %vm14_vm0 = vcmask 261120   ;;  %s69_s15 = smov 32   ;;  %s109_s0 = inlined_call_operand.vmem [shape: f32[2,8,32], index: 0, kind: input, shape index: {}]   ;;  %s110_s1 = inlined_call_operand.vmem [shape: f32[1,64,32], index: 1, kind: input, shape index: {}]   ;;  %s111_s2 = inlined_call_operand.hbm [shape: f32[2,8,64], index: 2, kind: output, shape index: {}]  }
   0x1   :  { %v17_v0 = vld [vmem:[%s110_s1] sm:$0xff]  ;;  %v13_v2 = vld [vmem:[%s109_s0 + $0x8] sm:$0xff] }
   0x2   :  { %v12_v1 = vld [vmem:[%s109_s0] sm:$0xff]  ;;  %19 = vrot.lane.b32.xlu0 %v17_v0, %s69_s15  ;;  %16 = vst.msk [vmem:[#allocation2 + $0x8] sm:$0xff] %vm14_vm0, %v13_v2 }
   0x3   :  { %15 = vst.msk [vmem:[#allocation2] sm:$0xff] %vm14_vm0, %v12_v1 }
   0x4   :  { %7 = vsyncpa [#allocation3], 0  ;;  %s70_s16 = smov [#allocation2]   ;;  %vm22_vm1 = vcmask 523520  }
   0x5   :  { %s30_s17 = sshll.u32 %s70_s16, 4  ;;  %s31_s17 = int_to_ptr.vmem [resolvable:$true] %s30_s17 }
   0x6   :  { %s45_s1 = scalar_lea.vmem %s31_s17, 256  ;;  %p50_p1 = scmp.lt.s32.totalorder %s31_s17, %s31_s17 }
   0x7   :  { %p46_p0 = scmp.ne.s32.totalorder %s31_s17, %s45_s1  ;;  %p51_p2 = scmp.lt.s32.totalorder %s45_s1, %s45_s1 }
   0x9   :  { %p52_p3 = por %p51_p2, %p50_p1 }
   0xb   :  { %p53_p4 = pnand %p52_p3, %p46_p0 }
  0x74   :  { %v20_v3 = vpop.permute.xlu0 %19 }
  0x75   :  { %23 = vst.msk [vmem:[#allocation2] sm:$0xff] %vm22_vm1, %v20_v3  ;;  %24 = vst.msk [vmem:[#allocation2 + $0x8] sm:$0xff] %vm22_vm1, %v20_v3 }
  0x76   :  { %56 = shalt.err (!%p53_p4)
}
  0x77   :  { %s57_s19 = scalar_lea.hbm %s111_s2, 256 }
  0x78   :  { %p58_p5 = scmp.ne.s32.totalorder %s111_s2, %s57_s19  ;;  %p61_p6 = scmp.lt.u32.totalorder %s57_s19, %s111_s2 }
  0x7a   :  { %p63_p7 = pnand %p61_p6, %p58_p5 }
  0x7c   :  { %66 = shalt.err (!%p63_p7)
}
  0x7d   :  { %s71_s24 = smov 128   ;;  %s72_s25 = smov 8  }
  0x7e   :  { %36 = dma.vmem_to_hbm [thread:$0]  %s31_s17, 256, %s111_s2, [#allocation3], %s71_s24, %s71_s24, %s72_s25  }
  0x7f   :  { %67 = dma.done.wait [#allocation3], 256  }
  0x80   :  { %68 = vsyncadd [#allocation3], 4294967040 }
  0x81   :  { %40 = vsyncpa [#allocation3], 1 }

</bundles_post_ra>
